<compile_context>
chip_gen: v7x
topology: tpu7x:2x2x1
jax: 0.10.0
libtpu: 0.0.40
codegen_flags: <defaults>
</compile_context>

<pallas_src>
import functools

import jax
import jax.numpy as jnp
from jax import lax
from jax.experimental import pallas as pl
from jax.experimental.pallas import tpu as pltpu

C = 4          # unified channel count (see TODO above)
KSIZE = 3
BN_EPS = 1e-5


# --------------------------------------------------------------------------------------
# pltpu.roll direction probe (lane axis and sublane axis), run once per process.
# Pins the rotation convention so tap placement / group reductions are sign-robust.
# --------------------------------------------------------------------------------------
def _probe_kernel(x_ref, lane_ref, sub_ref):
    lane_ref[...] = pltpu.roll(x_ref[...], shift=1, axis=1)
    sub_ref[...] = pltpu.roll(x_ref[...], shift=1, axis=0)


@functools.lru_cache(maxsize=None)
def _roll_signs():
    x = jnp.arange(8 * 128, dtype=jnp.float32).reshape(8, 128)
    lane, sub = pl.pallas_call(
        _probe_kernel,
        out_shape=(jax.ShapeDtypeStruct((8, 128), jnp.float32),
                   jax.ShapeDtypeStruct((8, 128), jnp.float32)),
    )(x)
    lane_sign = 1 if bool(jnp.array_equal(lane, jnp.roll(x, 1, axis=1))) else -1
    sub_sign = 1 if bool(jnp.array_equal(sub, jnp.roll(x, 1, axis=0))) else -1
    return lane_sign, sub_sign


# --------------------------------------------------------------------------------------
# Fused kernel: num_block x (conv1 -> relu -> bn1 -> conv2 -> bn2 -> residual)
# --------------------------------------------------------------------------------------
def _make_resnet_kernel(num_block, N, H, W, WPP, L, lane_sign, sub_sign):
    NC = N * C
    inv_cnt = 1.0 / float(N * H * W)       # BN normalizes over the interior only

    def lroll(x, s):                        # == jnp.roll(x, s, axis=1)  (lane axis)
        return x if s % L == 0 else pltpu.roll(x, shift=(lane_sign * s) % L, axis=1)

    def sroll(x, s):                        # == jnp.roll(x, s, axis=0)  (sublane axis)
        return x if s % NC == 0 else pltpu.roll(x, shift=(sub_sign * s) % NC, axis=0)

    def kernel(x_ref, w1_ref, b1_ref, g1_ref, be1_ref,
               w2_ref, b2_ref, g2_ref, be2_ref, o_ref):
        # Interior mask from an iota: True at real pixels, False on halo / lane tail.
        lane = lax.broadcasted_iota(jnp.int32, (NC, L), 1)
        hh = lane // WPP
        ww = lane - hh * WPP
        maskb = (hh >= 1) & (hh <= H) & (ww >= 1) & (ww <= W)

        # Per-output-channel sublane selectors (channel c sits at sublane n*C + c).
        ch = lax.broadcasted_iota(jnp.int32, (NC, 1), 0) % C
        chmask = [(ch == co).astype(jnp.float32) for co in range(C)]

        b1, g1, be1 = b1_ref[...], g1_ref[...], be1_ref[...]     # (NC, 1) columns
        b2, g2, be2 = b2_ref[...], g2_ref[...], be2_ref[...]

        def conv3x3(xp, w_ref, b_col):
            # xp: (NC, L) with zero halo/tail.  3x3 conv entirely on the VPU/XLU:
            #  * 2 big (+-WPP) + 6 single-lane rolls give the 9 tap alignments; interior
            #    outputs never read wrapped lanes (offsets stay inside [0, (H+2)*WPP)).
            #  * per tap, C FMAs against (NC,1) weight columns read from VMEM; accumulator
            #    `co` holds sum_t w[t,ci,co]*x_shift[ci] on the ci sublanes.
            #  * a 2-level sublane-roll tree reduces each accumulator over its C input
            #    channels per image group and places the result on the co sublanes.
            accs = [None] * C
            for dy in range(KSIZE):
                base = lroll(xp, -(dy - 1) * WPP)
                for dx in range(KSIZE):
                    shifted = lroll(base, -(dx - 1))
                    t = dy * KSIZE + dx
                    for co in range(C):
                        term = w_ref[t, co] * shifted       # (NC,1)*(NC,L) lane-bcast FMA
                        accs[co] = term if accs[co] is None else accs[co] + term
            out = None
            for co in range(C):
                g = accs[co] + sroll(accs[co], 1)
                g = g + sroll(g, 2)                         # g[n*C+C-1] = per-image ci-sum
                placed = chmask[co] * sroll(g, co - (C - 1))
                out = placed if out is None else out + placed
            return out + b_col

        def batchnorm(y, gamma, beta):
            # y is zero outside the interior, so lane sums only see real pixels; the
            # sublane roll-by-C tree folds per-image partial sums into per-channel totals,
            # already broadcast to every image group (requires N to be a power of two).
            s1 = jnp.sum(y, axis=1, keepdims=True)
            s2 = jnp.sum(y * y, axis=1, keepdims=True)
            k = C
            while k < NC:
                s1 = s1 + sroll(s1, k)
                s2 = s2 + sroll(s2, k)
                k *= 2
            mu = s1 * inv_cnt
            var = s2 * inv_cnt - mu * mu                    # one-pass biased variance
            return (y - mu) * (lax.rsqrt(var + BN_EPS) * gamma) + beta

        def block(xc):
            a1 = jnp.where(maskb, jnp.maximum(conv3x3(xc, w1_ref, b1), 0.0), 0.0)
            y1 = jnp.where(maskb, batchnorm(a1, g1, be1), 0.0)
            a2 = jnp.where(maskb, conv3x3(y1, w2_ref, b2), 0.0)
            y2 = batchnorm(a2, g2, be2)
            return jnp.where(maskb, xc + y2, 0.0)           # residual; halo/tail stay 0

        # Shared-weight block applied num_block times; fori_loop bounds live ranges.
        xc = lax.fori_loop(0, num_block, lambda _, x: block(x), x_ref[...])
        o_ref[...] = xc                                     # lane-dense unmasked store

    return kernel


@functools.partial(jax.jit, static_argnums=(2, 3, 4))
def _resnet_forward_jit(x_nchw, p, num_block, lane_sign, sub_sign):
    N, Cc, H, W = x_nchw.shape
    assert Cc == C
    NC = N * Cc
    HPP, WPP = H + 2, W + 2
    SP = HPP * WPP
    L = -(-SP // 128) * 128                                 # lane tail pad to 128 multiple

    # One-time layout glue (transpose-free: NCHW already has (n, c) leading).
    x = x_nchw.astype(jnp.float32)
    x_slab = jnp.pad(jnp.pad(x, ((0, 0), (0, 0), (1, 1), (1, 1))).reshape(NC, SP),
                     ((0, 0), (0, L - SP)))

    def col(v):          # per-channel vector -> (NC,1) column, entry[n*C+c] = v[c]
        return jnp.tile(v.reshape(1, Cc).astype(jnp.float32), (N, 1)).reshape(NC, 1)

    def wcols(w):        # (3,3,Cin,Cout) HWIO -> (9, Cout, NC, 1), [t,co,n*C+ci]=w[t,ci,co]
        wt = jnp.transpose(w.astype(jnp.float32).reshape(KSIZE * KSIZE, Cc, Cc), (0, 2, 1))
        return jnp.tile(wt[:, :, None, :], (1, 1, N, 1)).reshape(KSIZE * KSIZE, Cc, NC, 1)

    kernel = _make_resnet_kernel(num_block, N, H, W, WPP, L, lane_sign, sub_sign)
    vmem = pl.BlockSpec(memory_space=pltpu.MemorySpace.VMEM)
    # No grid: BN couples the whole (N,H,W) batch per channel and the total working set
    # is a few KiB, so the single-program whole-slab-in-VMEM form is launch-bound here.
    out_slab = pl.pallas_call(
        kernel,
        out_shape=jax.ShapeDtypeStruct((NC, L), jnp.float32),
        in_specs=[vmem] * 9,
        out_specs=vmem,
        compiler_params=pltpu.CompilerParams(vmem_limit_bytes=32 * 1024 * 1024),
    )(x_slab, wcols(p["w1"]), col(p["b1"]), col(p["g1"]), col(p["be1"]),
      wcols(p["w2"]), col(p["b2"]), col(p["g2"]), col(p["be2"]))

    return out_slab[:, :SP].reshape(N, Cc, HPP, WPP)[:, :, 1:1 + H, 1:1 + W]


def resnet_forward(x_nchw, params, num_block):
    lane_sign, sub_sign = _roll_signs()
    return _resnet_forward_jit(x_nchw, params, num_block, lane_sign, sub_sign)


# ----------------------- pure-JAX reference (for validation) -----------------------
def _block_reference(x, p):
    def conv(inp, w, b):
        y = jax.lax.conv_general_dilated(
            inp, w, window_strides=(1, 1), padding="SAME",
            dimension_numbers=("NHWC", "HWIO", "NHWC"),
            precision=jax.lax.Precision.HIGHEST)
        return y + b

    y = jnp.maximum(conv(x, p["w1"], p["b1"]), 0.0)
    mu = jnp.mean(y, axis=(0, 1, 2))
    var = jnp.mean((y - mu) ** 2, axis=(0, 1, 2))
    y = (y - mu) * jax.lax.rsqrt(var + BN_EPS) * p["g1"] + p["be1"]

    z = conv(y, p["w2"], p["b2"])
    mu2 = jnp.mean(z, axis=(0, 1, 2))
    var2 = jnp.mean((z - mu2) ** 2, axis=(0, 1, 2))
    z = (z - mu2) * jax.lax.rsqrt(var2 + BN_EPS) * p["g2"] + p["be2"]
    return x + z


def resnet_reference(x_nchw, params, num_block):
    x = jnp.transpose(x_nchw, (0, 2, 3, 1))
    for _ in range(num_block):
        x = _block_reference(x, params)
    return jnp.transpose(x, (0, 3, 1, 2))


# ----------------------- deterministic parameter init -----------------------
def init_params(key):
    ks = jax.random.split(key, 4)
    bound = 1.0 / float((C * KSIZE * KSIZE) ** 0.5)   # PyTorch-style uniform bound
    w1 = jax.random.uniform(ks[0], (KSIZE, KSIZE, C, C), jnp.float32, -bound, bound)
    b1 = jax.random.uniform(ks[1], (1, C), jnp.float32, -bound, bound)
    w2 = jax.random.uniform(ks[2], (KSIZE, KSIZE, C, C), jnp.float32, -bound, bound)
    b2 = jax.random.uniform(ks[3], (1, C), jnp.float32, -bound, bound)
    return dict(
        w1=w1, b1=b1, g1=jnp.ones((1, C), jnp.float32), be1=jnp.zeros((1, C), jnp.float32),
        w2=w2, b2=b2, g2=jnp.ones((1, C), jnp.float32), be2=jnp.zeros((1, C), jnp.float32))


if __name__ == "__main__":
    key = jax.random.PRNGKey(0)
    kx, kp = jax.random.split(key)

    N, H, W = 2, 16, 16
    num_block = 2

    x_nchw = jax.random.normal(kx, (N, C, H, W), jnp.float32)
    params = init_params(kp)

    out = jax.block_until_ready(resnet_forward(x_nchw, params, num_block))
    assert out.shape == (N, C, H, W)

    ref = resnet_reference(x_nchw, params, num_block)
    max_err = float(jnp.max(jnp.abs(out - ref)))
    assert max_err < 2e-3, f"max abs error vs reference too large: {max_err}"

    print("KERNEL_OK")
</pallas_src>

<mosaic_0001>
module attributes {stable_mosaic.version = 11 : i64} {
  func.func @_probe_kernel(%arg0: memref<8x128xf32, #tpu.memory_space<vmem>>, %arg1: memref<8x128xf32, #tpu.memory_space<vmem>>, %arg2: memref<8x128xf32, #tpu.memory_space<vmem>>) attributes {dimension_semantics = [], scalar_prefetch = 0 : i64, scratch_operands = 0 : i64, tpu.core_type = #tpu.core_type<tc>} {
    %c0 = arith.constant 0 : index
    %c0_0 = arith.constant 0 : index
    %0 = vector.load %arg0[%c0, %c0_0] : memref<8x128xf32, #tpu.memory_space<vmem>>, vector<8x128xf32>
    %c1_i32 = arith.constant 1 : i32
    %1 = tpu.dynamic_rotate %0 by %c1_i32 dim 1 : vector<8x128xf32>, i32 -> vector<8x128xf32>
    %c0_1 = arith.constant 0 : index
    %c0_2 = arith.constant 0 : index
    %2 = vector.load %arg1[%c0_1, %c0_2] : memref<8x128xf32, #tpu.memory_space<vmem>>, vector<8x128xf32>
    tpu.vector_store %arg1[%c0_1, %c0_2], %1 {strides = array<i32>} : memref<8x128xf32, #tpu.memory_space<vmem>>, vector<8x128xf32>,
    %c0_3 = arith.constant 0 : index
    %c0_4 = arith.constant 0 : index
    %3 = vector.load %arg0[%c0_3, %c0_4] : memref<8x128xf32, #tpu.memory_space<vmem>>, vector<8x128xf32>
    %c1_i32_5 = arith.constant 1 : i32
    %4 = tpu.dynamic_rotate %3 by %c1_i32_5 dim 0 : vector<8x128xf32>, i32 -> vector<8x128xf32>
    %c0_6 = arith.constant 0 : index
    %c0_7 = arith.constant 0 : index
    %5 = vector.load %arg2[%c0_6, %c0_7] : memref<8x128xf32, #tpu.memory_space<vmem>>, vector<8x128xf32>
    tpu.vector_store %arg2[%c0_6, %c0_7], %4 {strides = array<i32>} : memref<8x128xf32, #tpu.memory_space<vmem>>, vector<8x128xf32>,
    return
  }
}

</mosaic_0001>

<bundles_post_ra>
// kernel: tpu_custom_call.1
= control target key start
LH: loop header
LB: loop body
LE: loop exit
PB: predicated region body
PF: predicated region fallthrough
CT: control target
= control target key end

     0   :  { %8 = vsyncpa [#allocation3], 0  ;;  %s191_s0 = inlined_call_operand.hbm [shape: f32[8,128], index: 0, kind: input, shape index: {}]   ;;  %s192_s1 = inlined_call_operand.hbm [shape: f32[8,128], index: 1, kind: output, shape index: {0}]   ;;  %s193_s2 = inlined_call_operand.hbm [shape: f32[8,128], index: 2, kind: output, shape index: {1}]  }
   0x1   :  { %9 = vsyncpa [#allocation4], 0 }
   0x2   :  { %10 = vsyncpa [#allocation7], 0  ;;  %s136_s9 = smov [#allocation2]   ;;  %s64_s13 = scalar_lea.hbm %s191_s0, 128 }
   0x3   :  { %s17_s10 = sshll.u32 %s136_s9, 4  ;;  %p65_p0 = scmp.ne.s32.totalorder %s191_s0, %s64_s13  ;;  %s18_s10 = int_to_ptr.vmem [resolvable:$true] %s17_s10 }
   0x4   :  { %p68_p1 = scmp.lt.u32.totalorder %s64_s13, %s191_s0 }
   0x6   :  { %p70_p2 = pnand %p68_p1, %p65_p0 }
   0x8   :  { %73 = shalt.err (!%p70_p2)
}
   0x9   :  { %s74_s18 = scalar_lea.vmem %s18_s10, 128  ;;  %p79_p4 = scmp.lt.s32.totalorder %s18_s10, %s18_s10 }
   0xa   :  { %p75_p3 = scmp.ne.s32.totalorder %s18_s10, %s74_s18  ;;  %p80_p5 = scmp.lt.s32.totalorder %s74_s18, %s74_s18 }
   0xc   :  { %p81_p6 = por %p80_p5, %p79_p4 }
   0xe   :  { %p82_p7 = pnand %p81_p6, %p75_p3 }
  0x10   :  { %85 = shalt.err (!%p82_p7)
}
  0x11   :  { %20 = dma.hbm_to_vmem [thread:$0]  %s191_s0, 128, %s18_s10, [#allocation3]  }
  0x12   :  { %130 = dma.done.wait [#allocation3], 128  }
  0x13   :  { %131 = vsyncadd [#allocation3], 4294967168  ;;  %s137_s21 = smov [#allocation6]   ;;  %v24_v0 = vld [vmem:[#allocation2] sm:$0xff]  ;;  %s138_s23 = smov 1  }
  0x14   :  { %s47_s22 = sshll.u32 %s137_s21, 4  ;;  %25 = vrot.lane.b32.xlu0 %v24_v0, %s138_s23  ;;  %v29_v1 = vrot.slane %v24_v0, 7  ;;  %s48_s22 = int_to_ptr.vmem [resolvable:$true] %s47_s22 }
  0x15   :  { %s86_s24 = scalar_lea.vmem %s48_s22, 128  ;;  %p91_p9 = scmp.lt.s32.totalorder %s48_s22, %s48_s22 }
  0x16   :  { %30 = vst [vmem:[#allocation6] sm:$0xff] %v29_v1  ;;  %p87_p8 = scmp.ne.s32.totalorder %s48_s22, %s86_s24  ;;  %p92_p10 = scmp.lt.s32.totalorder %s86_s24, %s86_s24 }
  0x18   :  { %p93_p11 = por %p92_p10, %p91_p9 }
  0x1a   :  { %p94_p12 = pnand %p93_p11, %p87_p8 }
  0x1c   :  { %97 = shalt.err (!%p94_p12)
}
  0x1d   :  { %s98_s0 = scalar_lea.hbm %s193_s2, 128 }
  0x1e   :  { %p99_p13 = scmp.ne.s32.totalorder %s193_s2, %s98_s0  ;;  %p102_p0 = scmp.lt.u32.totalorder %s98_s0, %s193_s2 }
  0x20   :  { %p104_p1 = pnand %p102_p0, %p99_p13 }
  0x22   :  { %107 = shalt.err (!%p104_p1)
}
  0x23   :  { %50 = dma.vmem_to_hbm [thread:$0]  %s48_s22, 128, %s193_s2, [#allocation7]  }
  0x24   :  { %s139_s5 = smov [#allocation5]  }
  0x25   :  { %s37_s6 = sshll.u32 %s139_s5, 4  ;;  %s38_s6 = int_to_ptr.vmem [resolvable:$true] %s37_s6 }
  0x26   :  { %s108_s7 = scalar_lea.vmem %s38_s6, 128  ;;  %p113_p3 = scmp.lt.s32.totalorder %s38_s6, %s38_s6 }
  0x27   :  { %p109_p2 = scmp.ne.s32.totalorder %s38_s6, %s108_s7  ;;  %p114_p4 = scmp.lt.s32.totalorder %s108_s7, %s108_s7 }
  0x29   :  { %p115_p5 = por %p114_p4, %p113_p3 }
  0x2b   :  { %p116_p6 = pnand %p115_p5, %p109_p2 }
  0x86   :  { %v26_v2 = vpop.permute.xlu0 %25 }
  0x87   :  { %27 = vst [vmem:[#allocation5] sm:$0xff] %v26_v2 }
  0x88   :  { %119 = shalt.err (!%p116_p6)
}
  0x89   :  { %s120_s10 = scalar_lea.hbm %s192_s1, 128 }
  0x8a   :  { %p121_p7 = scmp.ne.s32.totalorder %s192_s1, %s120_s10  ;;  %p124_p8 = scmp.lt.u32.totalorder %s120_s10, %s192_s1 }
  0x8c   :  { %p126_p9 = pnand %p124_p8, %p121_p7 }
  0x8e   :  { %129 = shalt.err (!%p126_p9)
}
  0x8f   :  { %40 = dma.vmem_to_hbm [thread:$0]  %s38_s6, 128, %s192_s1, [#allocation4]  }
  0x90   :  { %132 = dma.done.wait [#allocation4], 128  }
  0x91   :  { %133 = vsyncadd [#allocation4], 4294967168 }
  0x92   :  { %134 = dma.done.wait [#allocation7], 128  }
  0x93   :  { %135 = vsyncadd [#allocation7], 4294967168 }
  0x94   :  { %57 = vsyncpa [#allocation3], 1 }
  0x95   :  { %58 = vsyncpa [#allocation4], 1 }
  0x96   :  { %59 = vsyncpa [#allocation7], 1 }

</bundles_post_ra>
